<compile_context>
chip_gen: v5e
topology: v5e:2x2
jax: 0.10.0
libtpu: 0.0.40
codegen_flags: <defaults>
</compile_context>

<pallas_src>
import jax
import jax.numpy as jnp
from jax.experimental import pallas as pl
from jax.experimental.pallas import tpu as pltpu

EPS = 1e-5


def _round_up(x, m):
    return ((x + m - 1) // m) * m


def head_kernel(x_ref, wd_ref, bd_ref, wo_ref, bo_ref, o_ref):
    """Fused head: (BN1-folded) dense -> tanh -> (BN2-folded) out_proj.

    x_ref  : [TILE_B, F]  bf16 activation tile (streamed, double-buffered)
    wd_ref : [F, H]       bf16 dense weight with BN1 scale folded in (resident)
    bd_ref : [1, H]       f32  dense bias with BN1 shift folded in (resident)
    wo_ref : [H, Cp]      bf16 out_proj weight with BN2 scale folded in, lane-padded (resident)
    bo_ref : [1, Cp]      f32  out_proj bias with BN2 shift folded in, lane-padded (resident)
    o_ref  : [TILE_B, Cp] f32  logits tile (lane-dense, unmasked stores)
    """
    # dense + tanh (BN1 folded into wd/bd; dropout is eval-mode identity).
    # bf16 x bf16 -> f32 accumulate is the native MXU path on v5e/v6e/v7x.
    # TODO(synk): training-mode dropout (stochastic masking via pltpu.prng_*) not implemented.
    h = jnp.dot(x_ref[...], wd_ref[...], preferred_element_type=jnp.float32) + bd_ref[...]
    h = jnp.tanh(h).astype(jnp.bfloat16)   # EUP slot; bf16 cast folds into the epilogue

    # out_proj (BN2 folded into wo/bo); logits kept in f32 for downstream softmax.
    out = jnp.dot(h, wo_ref[...], preferred_element_type=jnp.float32) + bo_ref[...]
    o_ref[...] = out.astype(o_ref.dtype)


def prepare_head_params(params, *, compute_dtype=jnp.bfloat16):
    """One-time weight prep: fold BN1 -> dense and BN2 -> out_proj, pre-transpose,
    lane-pad the class dimension to a multiple of 128, and cast weights to bf16.

    dense(BN1(x)) = x @ (s1[:,None] * Wd^T) + (t1 @ Wd^T + bd),  s1 = g1*rsqrt(v1+eps),
                                                                  t1 = b1 - m1*s1
    out_proj(BN2(h)) analogously with s2/t2.  Eval-mode only (running stats).
    """
    s1 = params["bn1_gamma"] * jax.lax.rsqrt(params["bn1_var"] + EPS)
    t1 = params["bn1_beta"] - params["bn1_mean"] * s1
    wd_t = params["dense_w"].T                        # [F, H]
    wd = s1[:, None] * wd_t                           # BN1 scale folded into weight
    bd = t1 @ wd_t + params["dense_b"]                # BN1 shift folded into bias

    s2 = params["bn2_gamma"] * jax.lax.rsqrt(params["bn2_var"] + EPS)
    t2 = params["bn2_beta"] - params["bn2_mean"] * s2
    wo_t = params["out_w"].T                          # [H, C]
    wo = s2[:, None] * wo_t                           # BN2 scale folded into weight
    bo = t2 @ wo_t + params["out_b"]                  # BN2 shift folded into bias

    # Lane-pad classes to 128 so the kernel's output stores are unmasked full-lane vst.
    num_classes = wo.shape[1]
    c_pad = _round_up(max(num_classes, 128), 128)
    wo = jnp.pad(wo, ((0, 0), (0, c_pad - num_classes)))
    bo = jnp.pad(bo, (0, c_pad - num_classes))

    return {
        "wd": wd.astype(compute_dtype),
        "bd": bd.reshape(1, -1).astype(jnp.float32),
        "wo": wo.astype(compute_dtype),
        "bo": bo.reshape(1, -1).astype(jnp.float32),
        "num_classes": int(num_classes),
    }


def _default_tile_b():
    # v6e's 32 MiB default scoped VMEM comfortably fits bigger bf16 tiles; stay at 512
    # elsewhere (v5e: 16 MiB scoped default, v7x: 64 MiB physical shared by 2 TCs).
    try:
        kind = jax.devices()[0].device_kind.lower()
    except Exception:
        kind = ""
    return 1024 if "v6" in kind else 512


def roberta_classification_head(features, prepped, *, tile_b=None):
    """features: [B, F]. prepped: output of prepare_head_params (call once, reuse)."""
    B, F = features.shape
    H, Cp = prepped["wo"].shape
    C = prepped["num_classes"]

    if tile_b is None:
        tile_b = _default_tile_b()

    # Batch tile: multiple of 8; clamp so the grid has >=2 steps when B allows it, so
    # the "parallel" batch axis actually gives both v7x TensorCores work.
    tb = max(8, min(_round_up(tile_b, 8), _round_up(pl.cdiv(B, 2), 8)))
    if tb >= B:
        tb = _round_up(B, 8)        # single step; partial rows masked on store
    grid = pl.cdiv(B, tb)

    # bf16 halves x's HBM traffic and VMEM footprint; ideally the upstream encoder
    # already produces bf16 activations and this cast is a no-op.
    x = features.astype(prepped["wd"].dtype)

    itemsize_x = jnp.dtype(x.dtype).itemsize
    weight_bytes = (prepped["wd"].size * jnp.dtype(prepped["wd"].dtype).itemsize
                    + prepped["wo"].size * jnp.dtype(prepped["wo"].dtype).itemsize
                    + prepped["bd"].size * 4 + prepped["bo"].size * 4)
    cost = pl.CostEstimate(
        flops=2 * B * F * H + 2 * B * H * Cp,
        transcendentals=B * H,
        bytes_accessed=B * F * itemsize_x + weight_bytes + B * Cp * 4,
    )

    def _call(single_buffer_weights):
        # Resident weights never change block index -> single-buffer them to save VMEM.
        w_kw = {"pipeline_mode": pl.Buffered(1)} if single_buffer_weights else {}
        return pl.pallas_call(
            head_kernel,
            out_shape=jax.ShapeDtypeStruct((B, Cp), jnp.float32),
            grid=(grid,),
            in_specs=[
                pl.BlockSpec((tb, F), lambda i: (i, 0)),            # x: tiled over batch
                pl.BlockSpec((F, H), lambda i: (0, 0), **w_kw),     # folded dense weight
                pl.BlockSpec((1, H), lambda i: (0, 0), **w_kw),     # folded dense bias
                pl.BlockSpec((H, Cp), lambda i: (0, 0), **w_kw),    # folded out_proj weight
                pl.BlockSpec((1, Cp), lambda i: (0, 0), **w_kw),    # folded out_proj bias
            ],
            out_specs=pl.BlockSpec((tb, Cp), lambda i: (i, 0)),
            compiler_params=pltpu.CompilerParams(
                # batch axis is independent -> shard across both v7x TensorCores
                dimension_semantics=("parallel",),
            ),
            cost_estimate=cost,
        )(x, prepped["wd"], prepped["bd"], prepped["wo"], prepped["bo"])

    try:
        out = _call(True)
    except Exception:
        # Older jax may reject pipeline_mode on BlockSpec; fall back to default buffering.
        out = _call(False)

    return out[:, :C]


def reference_forward(features, params):
    """Plain-JAX f32 reference of the same eval-mode forward (unfolded BN) for sanity."""
    x = features
    x = (x - params["bn1_mean"]) / jnp.sqrt(params["bn1_var"] + EPS)
    x = x * params["bn1_gamma"] + params["bn1_beta"]
    h = jnp.tanh(x @ params["dense_w"].T + params["dense_b"])
    h = (h - params["bn2_mean"]) / jnp.sqrt(params["bn2_var"] + EPS)
    h = h * params["bn2_gamma"] + params["bn2_beta"]
    return h @ params["out_w"].T + params["out_b"]


if __name__ == "__main__":
    B, INPUT_SIZE, HIDDEN, NUM_CLASSES = 8, 32, 16, 4

    key = jax.random.PRNGKey(0)
    keys = jax.random.split(key, 10)

    features = jax.random.normal(keys[0], (B, INPUT_SIZE), dtype=jnp.float32)

    params = {
        # bn1 over input_size
        "bn1_gamma": jax.random.uniform(keys[1], (INPUT_SIZE,), minval=0.5, maxval=1.5),
        "bn1_beta":  jax.random.normal(keys[2], (INPUT_SIZE,)) * 0.1,
        "bn1_mean":  jax.random.normal(keys[3], (INPUT_SIZE,)) * 0.1,
        "bn1_var":   jax.random.uniform(keys[4], (INPUT_SIZE,), minval=0.5, maxval=1.5),
        # dense: Linear(input_size, hidden)  -> weight [H, F], bias [H]
        "dense_w": jax.random.normal(keys[5], (HIDDEN, INPUT_SIZE)) * (1.0 / jnp.sqrt(INPUT_SIZE)),
        "dense_b": jax.random.normal(keys[6], (HIDDEN,)) * 0.01,
        # bn2 over hidden
        "bn2_gamma": jax.random.uniform(keys[7], (HIDDEN,), minval=0.5, maxval=1.5),
        "bn2_beta":  jnp.zeros((HIDDEN,), jnp.float32),
        "bn2_mean":  jnp.zeros((HIDDEN,), jnp.float32),
        "bn2_var":   jnp.ones((HIDDEN,), jnp.float32),
        # out_proj: Linear(hidden, num_classes) -> weight [C, H], bias [C]
        "out_w": jax.random.normal(keys[8], (NUM_CLASSES, HIDDEN)) * (1.0 / jnp.sqrt(HIDDEN)),
        "out_b": jax.random.normal(keys[9], (NUM_CLASSES,)) * 0.01,
    }
    params = {k: v.astype(jnp.float32) for k, v in params.items()}

    # One-time weight preparation (BN folding + transpose + lane-pad + bf16 cast).
    prepped = prepare_head_params(params)

    out = roberta_classification_head(features, prepped)
    out = jax.block_until_ready(out)

    ref = reference_forward(features, params)
    assert out.shape == (B, NUM_CLASSES)
    # bf16 matmul path vs f32 reference -> relaxed tolerance.
    assert jnp.allclose(out, ref, atol=5e-2, rtol=5e-2), "mismatch vs reference"

    print("KERNEL_OK")
</pallas_src>

<mosaic_0001>
module attributes {stable_mosaic.version = 11 : i64} {
  func.func @head_kernel(%arg0: i32, %arg1: memref<8x32xbf16, #tpu.memory_space<vmem>>, %arg2: memref<32x16xbf16, #tpu.memory_space<vmem>>, %arg3: memref<1x16xf32, #tpu.memory_space<vmem>>, %arg4: memref<16x128xbf16, #tpu.memory_space<vmem>>, %arg5: memref<1x128xf32, #tpu.memory_space<vmem>>, %arg6: memref<8x128xf32, #tpu.memory_space<vmem>>) attributes {dimension_semantics = [#tpu.dimension_semantics<parallel>], iteration_bounds = array<i64: 1>, scalar_prefetch = 0 : i64, scratch_operands = 0 : i64, tpu.core_type = #tpu.core_type<tc>, window_params = [{transform_indices = @transform_0, window_bounds = array<i64: 8, 32>}, {pipeline_mode = #tpu.pipeline_mode<synchronous>, transform_indices = @transform_1, window_bounds = array<i64: 32, 16>}, {pipeline_mode = #tpu.pipeline_mode<synchronous>, transform_indices = @transform_2, window_bounds = array<i64: 1, 16>}, {pipeline_mode = #tpu.pipeline_mode<synchronous>, transform_indices = @transform_3, window_bounds = array<i64: 16, 128>}, {pipeline_mode = #tpu.pipeline_mode<synchronous>, transform_indices = @transform_4, window_bounds = array<i64: 1, 128>}, {transform_indices = @transform_5, window_bounds = array<i64: 8, 128>}]} {
    %c0 = arith.constant 0 : index
    %c0_0 = arith.constant 0 : index
    %0 = vector.load %arg1[%c0, %c0_0] : memref<8x32xbf16, #tpu.memory_space<vmem>>, vector<8x32xbf16>
    %c0_1 = arith.constant 0 : index
    %c0_2 = arith.constant 0 : index
    %1 = vector.load %arg2[%c0_1, %c0_2] : memref<32x16xbf16, #tpu.memory_space<vmem>>, vector<32x16xbf16>
    %cst = arith.constant dense<0.000000e+00> : vector<8x16xf32>
    %2 = tpu.matmul %0, %1, %cst {dimension_numbers = #tpu.dot_dimension_numbers<[1], [0], [0], [1], [0, 0, 1, 1], [], []>} : vector<8x32xbf16>, vector<32x16xbf16>, vector<8x16xf32> -> vector<8x16xf32>
    %c0_3 = arith.constant 0 : index
    %c0_4 = arith.constant 0 : index
    %3 = vector.load %arg3[%c0_3, %c0_4] : memref<1x16xf32, #tpu.memory_space<vmem>>, vector<1x16xf32>
    %4 = vector.broadcast %3 : vector<1x16xf32> to vector<8x16xf32>
    %5 = arith.addf %2, %4 : vector<8x16xf32>
    %6 = math.tanh %5 : vector<8x16xf32>
    %7 = arith.truncf %6 : vector<8x16xf32> to vector<8x16xbf16>
    %c0_5 = arith.constant 0 : index
    %c0_6 = arith.constant 0 : index
    %8 = vector.load %arg4[%c0_5, %c0_6] : memref<16x128xbf16, #tpu.memory_space<vmem>>, vector<16x128xbf16>
    %cst_7 = arith.constant dense<0.000000e+00> : vector<8x128xf32>
    %9 = tpu.matmul %7, %8, %cst_7 {dimension_numbers = #tpu.dot_dimension_numbers<[1], [0], [0], [1], [0, 0, 1, 1], [], []>} : vector<8x16xbf16>, vector<16x128xbf16>, vector<8x128xf32> -> vector<8x128xf32>
    %c0_8 = arith.constant 0 : index
    %c0_9 = arith.constant 0 : index
    %10 = vector.load %arg5[%c0_8, %c0_9] : memref<1x128xf32, #tpu.memory_space<vmem>>, vector<1x128xf32>
    %11 = vector.broadcast %10 : vector<1x128xf32> to vector<8x128xf32>
    %12 = arith.addf %9, %11 : vector<8x128xf32>
    %c0_10 = arith.constant 0 : index
    %c0_11 = arith.constant 0 : index
    %13 = vector.load %arg6[%c0_10, %c0_11] : memref<8x128xf32, #tpu.memory_space<vmem>>, vector<8x128xf32>
    tpu.vector_store %arg6[%c0_10, %c0_11], %12 {strides = array<i32>} : memref<8x128xf32, #tpu.memory_space<vmem>>, vector<8x128xf32>,
    return
  }
  func.func @transform_0(%arg0: i32) -> (i32, i32) {
    %c0_i32 = arith.constant 0 : i32
    %c0_i32_0 = arith.constant 0 : i32
    return %arg0, %c0_i32 : i32, i32
  }
  func.func @transform_1(%arg0: i32) -> (i32, i32) {
    %c0_i32 = arith.constant 0 : i32
    %c0_i32_0 = arith.constant 0 : i32
    %c0_i32_1 = arith.constant 0 : i32
    return %c0_i32, %c0_i32_0 : i32, i32
  }
  func.func @transform_2(%arg0: i32) -> (i32, i32) {
    %c0_i32 = arith.constant 0 : i32
    %c0_i32_0 = arith.constant 0 : i32
    %c0_i32_1 = arith.constant 0 : i32
    return %c0_i32, %c0_i32_0 : i32, i32
  }
  func.func @transform_3(%arg0: i32) -> (i32, i32) {
    %c0_i32 = arith.constant 0 : i32
    %c0_i32_0 = arith.constant 0 : i32
    %c0_i32_1 = arith.constant 0 : i32
    return %c0_i32, %c0_i32_0 : i32, i32
  }
  func.func @transform_4(%arg0: i32) -> (i32, i32) {
    %c0_i32 = arith.constant 0 : i32
    %c0_i32_0 = arith.constant 0 : i32
    %c0_i32_1 = arith.constant 0 : i32
    return %c0_i32, %c0_i32_0 : i32, i32
  }
  func.func @transform_5(%arg0: i32) -> (i32, i32) {
    %c0_i32 = arith.constant 0 : i32
    %c0_i32_0 = arith.constant 0 : i32
    return %arg0, %c0_i32 : i32, i32
  }
}

module attributes {stable_mosaic.version = 11 : i64} {
  func.func @head_kernel(%arg0: i32, %arg1: memref<8x32xbf16, #tpu.memory_space<vmem>>, %arg2: memref<32x16xbf16, #tpu.memory_space<vmem>>, %arg3: memref<1x16xf32, #tpu.memory_space<vmem>>, %arg4: memref<16x128xbf16, #tpu.memory_space<vmem>>, %arg5: memref<1x128xf32, #tpu.memory_space<vmem>>, %arg6: memref<8x128xf32, #tpu.memory_space<vmem>>) attributes {dimension_semantics = [#tpu.dimension_semantics<parallel>], iteration_bounds = array<i64: 1>, scalar_prefetch = 0 : i64, scratch_operands = 0 : i64, tpu.core_type = #tpu.core_type<tc>, window_params = [{transform_indices = @transform_0, window_bounds = array<i64: 8, 32>}, {pipeline_mode = #tpu.pipeline_mode<synchronous>, transform_indices = @transform_1, window_bounds = array<i64: 32, 16>}, {pipeline_mode = #tpu.pipeline_mode<synchronous>, transform_indices = @transform_2, window_bounds = array<i64: 1, 16>}, {pipeline_mode = #tpu.pipeline_mode<synchronous>, transform_indices = @transform_3, window_bounds = array<i64: 16, 128>}, {pipeline_mode = #tpu.pipeline_mode<synchronous>, transform_indices = @transform_4, window_bounds = array<i64: 1, 128>}, {transform_indices = @transform_5, window_bounds = array<i64: 8, 128>}]} {
    %c0 = arith.constant 0 : index
    %c0_0 = arith.constant 0 : index
    %0 = vector.load %arg1[%c0, %c0_0] : memref<8x32xbf16, #tpu.memory_space<vmem>>, vector<8x32xbf16>
    %c0_1 = arith.constant 0 : index
    %c0_2 = arith.constant 0 : index
    %1 = vector.load %arg2[%c0_1, %c0_2] : memref<32x16xbf16, #tpu.memory_space<vmem>>, vector<32x16xbf16>
    %cst = arith.constant dense<0.000000e+00> : vector<8x16xf32>
    %2 = tpu.matmul %0, %1, %cst {dimension_numbers = #tpu.dot_dimension_numbers<[1], [0], [0], [1], [0, 0, 1, 1], [], []>} : vector<8x32xbf16>, vector<32x16xbf16>, vector<8x16xf32> -> vector<8x16xf32>
    %c0_3 = arith.constant 0 : index
    %c0_4 = arith.constant 0 : index
    %3 = vector.load %arg3[%c0_3, %c0_4] : memref<1x16xf32, #tpu.memory_space<vmem>>, vector<1x16xf32>
    %4 = vector.broadcast %3 : vector<1x16xf32> to vector<8x16xf32>
    %5 = arith.addf %2, %4 : vector<8x16xf32>
    %6 = math.tanh %5 : vector<8x16xf32>
    %7 = arith.truncf %6 : vector<8x16xf32> to vector<8x16xbf16>
    %c0_5 = arith.constant 0 : index
    %c0_6 = arith.constant 0 : index
    %8 = vector.load %arg4[%c0_5, %c0_6] : memref<16x128xbf16, #tpu.memory_space<vmem>>, vector<16x128xbf16>
    %cst_7 = arith.constant dense<0.000000e+00> : vector<8x128xf32>
    %9 = tpu.matmul %7, %8, %cst_7 {dimension_numbers = #tpu.dot_dimension_numbers<[1], [0], [0], [1], [0, 0, 1, 1], [], []>} : vector<8x16xbf16>, vector<16x128xbf16>, vector<8x128xf32> -> vector<8x128xf32>
    %c0_8 = arith.constant 0 : index
    %c0_9 = arith.constant 0 : index
    %10 = vector.load %arg5[%c0_8, %c0_9] : memref<1x128xf32, #tpu.memory_space<vmem>>, vector<1x128xf32>
    %11 = vector.broadcast %10 : vector<1x128xf32> to vector<8x128xf32>
    %12 = arith.addf %9, %11 : vector<8x128xf32>
    %c0_10 = arith.constant 0 : index
    %c0_11 = arith.constant 0 : index
    %13 = vector.load %arg6[%c0_10, %c0_11] : memref<8x128xf32, #tpu.memory_space<vmem>>, vector<8x128xf32>
    tpu.vector_store %arg6[%c0_10, %c0_11], %12 {strides = array<i32>} : memref<8x128xf32, #tpu.memory_space<vmem>>, vector<8x128xf32>,
    return
  }
  func.func @transform_0(%arg0: i32) -> (i32, i32) {
    %c0_i32 = arith.constant 0 : i32
    %c0_i32_0 = arith.constant 0 : i32
    return %arg0, %c0_i32 : i32, i32
  }
  func.func @transform_1(%arg0: i32) -> (i32, i32) {
    %c0_i32 = arith.constant 0 : i32
    %c0_i32_0 = arith.constant 0 : i32
    %c0_i32_1 = arith.constant 0 : i32
    return %c0_i32, %c0_i32_0 : i32, i32
  }
  func.func @transform_2(%arg0: i32) -> (i32, i32) {
    %c0_i32 = arith.constant 0 : i32
    %c0_i32_0 = arith.constant 0 : i32
    %c0_i32_1 = arith.constant 0 : i32
    return %c0_i32, %c0_i32_0 : i32, i32
  }
  func.func @transform_3(%arg0: i32) -> (i32, i32) {
    %c0_i32 = arith.constant 0 : i32
    %c0_i32_0 = arith.constant 0 : i32
    %c0_i32_1 = arith.constant 0 : i32
    return %c0_i32, %c0_i32_0 : i32, i32
  }
  func.func @transform_4(%arg0: i32) -> (i32, i32) {
    %c0_i32 = arith.constant 0 : i32
    %c0_i32_0 = arith.constant 0 : i32
    %c0_i32_1 = arith.constant 0 : i32
    return %c0_i32, %c0_i32_0 : i32, i32
  }
  func.func @transform_5(%arg0: i32) -> (i32, i32) {
    %c0_i32 = arith.constant 0 : i32
    %c0_i32_0 = arith.constant 0 : i32
    return %arg0, %c0_i32 : i32, i32
  }
}

</mosaic_0001>

<bundles_post_ra>
// kernel: tpu_custom_call.1
= control target key start
LH: loop header
LB: loop body
LE: loop exit
PB: predicated region body
PF: predicated region fallthrough
CT: control target
= control target key end

     0   :  { %s208_s0 = inlined_call_operand.vmem [shape: bf16[8,32], index: 0, kind: input, shape index: {}]   ;;  %s209_s1 = inlined_call_operand.vmem [shape: bf16[32,16], index: 1, kind: input, shape index: {}]   ;;  %s210_s2 = inlined_call_operand.vmem [shape: f32[1,16], index: 2, kind: input, shape index: {}]   ;;  %s211_s3 = inlined_call_operand.vmem [shape: bf16[16,128], index: 3, kind: input, shape index: {}]   ;;  %s212_s4 = inlined_call_operand.vmem [shape: f32[1,128], index: 4, kind: input, shape index: {}]   ;;  %s213_s5 = inlined_call_operand.hbm [shape: f32[8,128], index: 5, kind: output, shape index: {}]  }
   0x1   :  { %v123_v0 = vld [vmem:[%s209_s1 + $0x8] sm:$0xff]  ;;  %v122_v1 = vld [vmem:[%s209_s1] sm:$0xff] }
   0x2   :  { %53 = vmatpush.bf16.msra.mxu0 %v123_v0 }
   0x3   :  { %10 = vsyncpa [#allocation3], 0  ;;  %v22_v2 = vld [vmem:[%s208_s0] sm:$0xf]  ;;  %vm43_vm0 = vcmask 261120   ;;  %vm74_vm1 = vcmask 130048  }
   0x4   :  { %v124_v3 = vld [vmem:[%s211_s3] sm:$0xff]  ;;  %s156_s28 = smov [#allocation2]   ;;  %s99_s6 = sshll.u32 %s213_s5, 4  ;;  %s100_s6 = int_to_ptr.hbm [resolvable:$true] %s99_s6 }
   0x5   :  { %85 = vmatpush.bf16.msra.mxu1 %v124_v3  ;;  %v126_v4 = vld [vmem:[%s210_s2] ss:$0 sm:$0xff]  ;;  %s97_s29 = sshll.u32 %s156_s28, 4  ;;  %s98_s29 = int_to_ptr.vmem [resolvable:$true] %s97_s29 }
   0x6   :  { %54 = vmatpush.bf16.msra.mxu0 %v122_v1  ;;  %v127_v10 = vld [vmem:[%s212_s4] ss:$0 sm:$0xff] }
   0x9   :  { %116 = vmatmul.msk.bf16.vlgmr.msra.gmra.mxu0 %vm43_vm0, %v22_v2 }
  0x86   :  { %v56_v5 = vpop.f32.mrf.mxu0 }
  0x87   :  { %v57_v6 = vadd.f32 %v126_v4, %v56_v5 }
  0x89   :  { %128 = vtanh.f32 %v57_v6 }
  0x8e   :  { %v58_v7 = vpop.f32.mrf.mxu0 }
  0x8f   :  { %v129_v8 = vpop.eup %128 }
  0x90   :  { %v61_v9 = vpack.c.bf16 %v129_v8, %v129_v8 }
  0x92   :  { %121 = vmatmul.msk.bf16.vlgmr.msra.gmra.mxu1 %vm74_vm1, %v61_v9 }
 0x10f   :  { %v87_v11 = vpop.f32.mrf.mxu1 }
 0x110   :  { %v88_v12 = vadd.f32 %v127_v10, %v87_v11 }
 0x112   :  { %91 = vst [vmem:[#allocation2] sm:$0xff] %v88_v12 }
 0x113   :  { %102 = dma.vmem_to_hbm [thread:$0]  %s98_s29, 128, %s100_s6, [#allocation3]  }
 0x117   :  { %v89_v13 = vpop.f32.mrf.mxu1 }
 0x118   :  { %154 = dma.done.wait [#allocation3], 128  }
 0x119   :  { %155 = vsyncadd [#allocation3], 4294967168 }
 0x11a   :  { %107 = vsyncpa [#allocation3], 1 }

// kernel: tpu_custom_call.1
= control target key start
LH: loop header
LB: loop body
LE: loop exit
PB: predicated region body
PF: predicated region fallthrough
CT: control target
= control target key end

     0   :  { %s208_s0 = inlined_call_operand.vmem [shape: bf16[8,32], index: 0, kind: input, shape index: {}]   ;;  %s209_s1 = inlined_call_operand.vmem [shape: bf16[32,16], index: 1, kind: input, shape index: {}]   ;;  %s210_s2 = inlined_call_operand.vmem [shape: f32[1,16], index: 2, kind: input, shape index: {}]   ;;  %s211_s3 = inlined_call_operand.vmem [shape: bf16[16,128], index: 3, kind: input, shape index: {}]   ;;  %s212_s4 = inlined_call_operand.vmem [shape: f32[1,128], index: 4, kind: input, shape index: {}]   ;;  %s213_s5 = inlined_call_operand.hbm [shape: f32[8,128], index: 5, kind: output, shape index: {}]  }
   0x1   :  { %v123_v0 = vld [vmem:[%s209_s1 + $0x8] sm:$0xff]  ;;  %v122_v1 = vld [vmem:[%s209_s1] sm:$0xff] }
   0x2   :  { %53 = vmatpush.bf16.msra.mxu0 %v123_v0 }
   0x3   :  { %10 = vsyncpa [#allocation3], 0  ;;  %v22_v2 = vld [vmem:[%s208_s0] sm:$0xf]  ;;  %vm43_vm0 = vcmask 261120   ;;  %vm74_vm1 = vcmask 130048  }
   0x4   :  { %v124_v3 = vld [vmem:[%s211_s3] sm:$0xff]  ;;  %s156_s28 = smov [#allocation2]   ;;  %s99_s6 = sshll.u32 %s213_s5, 4  ;;  %s100_s6 = int_to_ptr.hbm [resolvable:$true] %s99_s6 }
   0x5   :  { %85 = vmatpush.bf16.msra.mxu1 %v124_v3  ;;  %v126_v4 = vld [vmem:[%s210_s2] ss:$0 sm:$0xff]  ;;  %s97_s29 = sshll.u32 %s156_s28, 4  ;;  %s98_s29 = int_to_ptr.vmem [resolvable:$true] %s97_s29 }
   0x6   :  { %54 = vmatpush.bf16.msra.mxu0 %v122_v1  ;;  %v127_v10 = vld [vmem:[%s212_s4] ss:$0 sm:$0xff] }
   0x9   :  { %116 = vmatmul.msk.bf16.vlgmr.msra.gmra.mxu0 %vm43_vm0, %v22_v2 }
  0x86   :  { %v56_v5 = vpop.f32.mrf.mxu0 }
  0x87   :  { %v57_v6 = vadd.f32 %v126_v4, %v56_v5 }
  0x89   :  { %128 = vtanh.f32 %v57_v6 }
  0x8e   :  { %v58_v7 = vpop.f32.mrf.mxu0 }
  0x8f   :  { %v129_v8 = vpop.eup %128 }
  0x90   :  { %v61_v9 = vpack.c.bf16 %v129_v8, %v129_v8 }
  0x92   :  { %121 = vmatmul.msk.bf16.vlgmr.msra.gmra.mxu1 %vm74_vm1, %v61_v9 }
 0x10f   :  { %v87_v11 = vpop.f32.mrf.mxu1 }
 0x110   :  { %v88_v12 = vadd.f32 %v127_v10, %v87_v11 }
 0x112   :  { %91 = vst [vmem:[#allocation2] sm:$0xff] %v88_v12 }
 0x113   :  { %102 = dma.vmem_to_hbm [thread:$0]  %s98_s29, 128, %s100_s6, [#allocation3]  }
 0x117   :  { %v89_v13 = vpop.f32.mrf.mxu1 }
 0x118   :  { %154 = dma.done.wait [#allocation3], 128  }
 0x119   :  { %155 = vsyncadd [#allocation3], 4294967168 }
 0x11a   :  { %107 = vsyncpa [#allocation3], 1 }

</bundles_post_ra>
